<compile_context>
chip_gen: v7x
topology: tpu7x:2x2x1
jax: 0.10.0
libtpu: 0.0.40
codegen_flags: <defaults>
</compile_context>

<pallas_src>
import jax
import jax.numpy as jnp
from jax.experimental import pallas as pl
from jax.experimental.pallas import tpu as pltpu

IGNORE_INDEX = -1

# small shapes consistent with the module's forward
B = 2            # batch
S = 8            # sequence length
H = 32           # hidden dim of the synthetic model
V = 128          # vocab size (lane-aligned)
MAX_TILE_T = 128  # token-tile ceiling once T grows beyond one tile


def _ce_kernel(x_ref, w_ref, labels_ref, loss_ref, nll_acc, valid_acc):
    """Fused logits-matmul + masked cross-entropy, reduced to a scalar loss.

    x_ref:      (TILE_T, H)  f32   embedded input tokens
    w_ref:      (H, V)       f32   output projection (grid-invariant)
    labels_ref: (TILE_T, 1)  int32 target token (IGNORE_INDEX => masked)
    loss_ref:   (1, 1)       f32   final mean NLL over valid tokens
    nll_acc:    (1, 1)       f32   running sum of -log p(label)
    valid_acc:  (1, 1)       f32   running count of valid tokens
    """
    t = pl.program_id(0)

    @pl.when(t == 0)
    def _():
        nll_acc[...] = jnp.zeros_like(nll_acc)
        valid_acc[...] = jnp.zeros_like(valid_acc)

    # MXU matmul: (TILE_T, H) @ (H, V) -> (TILE_T, V), f32 accumulation
    logits = jnp.dot(x_ref[...], w_ref[...], preferred_element_type=jnp.float32)

    # numerically-stable log-sum-exp over the vocab (lane) axis; keep f32
    m = jnp.max(logits, axis=-1, keepdims=True)                       # (TILE_T, 1)
    shifted = logits - m
    lse = jnp.log(jnp.sum(jnp.exp(shifted), axis=-1, keepdims=True))  # (TILE_T, 1)

    # one-hot gather of the label column directly on `shifted`
    # (no full (TILE_T, V) log-softmax tile is ever formed)
    labels = labels_ref[...]                                          # (TILE_T, 1)
    col = jax.lax.broadcasted_iota(jnp.int32, logits.shape, 1)
    onehot = (col == labels).astype(jnp.float32)
    tok_shifted = jnp.sum(shifted * onehot, axis=-1, keepdims=True)   # (TILE_T, 1)

    valid = (labels != IGNORE_INDEX).astype(jnp.float32)              # (TILE_T, 1)
    nll = (lse - tok_shifted) * valid                                 # -log p, masked

    nll_acc[...] += jnp.sum(nll, axis=0, keepdims=True)
    valid_acc[...] += jnp.sum(valid, axis=0, keepdims=True)

    @pl.when(t == pl.num_programs(0) - 1)
    def _():
        # matches F.cross_entropy's ignore_index-aware mean (NaN if all tokens
        # are masked, same as PyTorch).
        loss_ref[...] = nll_acc[...] / valid_acc[...]


def pallas_masked_cross_entropy(x_tokens, labels_flat, w):
    """x_tokens: (T, H) f32, labels_flat: (T,) int32, w: (H, V) f32 -> scalar loss."""
    T, h = x_tokens.shape
    v = w.shape[1]

    # collapse the grid when everything fits in one tile; otherwise 128-row tiles
    t_pad8 = pl.cdiv(T, 8) * 8
    tile_t = t_pad8 if t_pad8 <= MAX_TILE_T else MAX_TILE_T
    T_pad = pl.cdiv(T, tile_t) * tile_t

    x_pad = jnp.zeros((T_pad, h), jnp.float32).at[:T].set(x_tokens)
    # padded rows get IGNORE_INDEX -> zero contribution to both accumulators
    labels_pad = jnp.full((T_pad, 1), IGNORE_INDEX, jnp.int32).at[:T, 0].set(labels_flat)

    grid = (T_pad // tile_t,)
    loss = pl.pallas_call(
        _ce_kernel,
        out_shape=jax.ShapeDtypeStruct((1, 1), jnp.float32),
        grid_spec=pltpu.PrefetchScalarGridSpec(
            num_scalar_prefetch=0,
            grid=grid,
            in_specs=[
                pl.BlockSpec((tile_t, h), lambda t: (t, 0)),   # token tile of x
                pl.BlockSpec((h, v), lambda t: (0, 0)),        # full projection (invariant)
                pl.BlockSpec((tile_t, 1), lambda t: (t, 0)),   # token tile of labels
            ],
            out_specs=pl.BlockSpec((1, 1), lambda t: (0, 0)),  # single scalar loss
            scratch_shapes=[
                pltpu.VMEM((1, 1), jnp.float32),               # sum(nll)
                pltpu.VMEM((1, 1), jnp.float32),               # sum(valid)
            ],
        ),
        compiler_params=pltpu.CompilerParams(
            # token axis carries the scalar accumulators -> reduction axis
            dimension_semantics=("arbitrary",)),
    )(x_pad, w, labels_pad)

    return loss[0, 0]


def sft_get_cross_entropy_loss(seq, prompt_len, embed, w_out):
    """JAX port of SFTTrainer.get_cross_entropy_loss (with a synthetic model)."""
    b, s = seq.shape
    # prompt_mask_from_len
    prompt_mask = jnp.arange(s)[None, :] < prompt_len[:, None]        # (b, s) bool
    inp, labels = seq[:, :-1], seq[:, 1:]
    labels = jnp.where(prompt_mask[:, 1:], IGNORE_INDEX, labels).astype(jnp.int32)

    # synthetic model front-end (embedding gather = glue, not the hot path)
    x = embed[inp].astype(jnp.float32)                                # (b, n, H)
    n = s - 1
    return pallas_masked_cross_entropy(
        x.reshape(b * n, H), labels.reshape(b * n), w_out)


def reference_loss(seq, prompt_len, embed, w_out):
    b, s = seq.shape
    prompt_mask = jnp.arange(s)[None, :] < prompt_len[:, None]
    inp, labels = seq[:, :-1], seq[:, 1:]
    labels = jnp.where(prompt_mask[:, 1:], IGNORE_INDEX, labels)
    logits = embed[inp].astype(jnp.float32) @ w_out                   # (b, n, V)
    logp = jax.nn.log_softmax(logits, axis=-1)
    valid = labels != IGNORE_INDEX
    safe = jnp.where(valid, labels, 0)
    tok = jnp.take_along_axis(logp, safe[..., None], axis=-1)[..., 0]
    vf = valid.astype(jnp.float32)
    return -(tok * vf).sum() / vf.sum()


if __name__ == "__main__":
    key = jax.random.PRNGKey(0)
    k_seq, k_emb, k_w = jax.random.split(key, 3)

    # deterministic "dataset" batch and synthetic model parameters
    seq = jax.random.randint(k_seq, (B, S), 0, V, dtype=jnp.int32)
    prompt_len = jnp.array([3, 5], dtype=jnp.int32)                   # prompt lengths
    embed = jax.random.normal(k_emb, (V, H), jnp.float32) * 0.02
    w_out = jax.random.normal(k_w, (H, V), jnp.float32) * 0.02

    loss = sft_get_cross_entropy_loss(seq, prompt_len, embed, w_out)
    loss = jax.block_until_ready(loss)

    ref = jax.block_until_ready(reference_loss(seq, prompt_len, embed, w_out))
    assert jnp.allclose(loss, ref, rtol=1e-5, atol=1e-5), (loss, ref)

    print("KERNEL_OK")
</pallas_src>

<mosaic_0001>
module attributes {stable_mosaic.version = 11 : i64} {
  func.func @_ce_kernel(%arg0: i32, %arg1: memref<16x32xf32, #tpu.memory_space<vmem>>, %arg2: memref<32x128xf32, #tpu.memory_space<vmem>>, %arg3: memref<16x1xi32, #tpu.memory_space<vmem>>, %arg4: memref<1x1xf32, #tpu.memory_space<vmem>>, %arg5: memref<1x1xf32, #tpu.memory_space<vmem>>, %arg6: memref<1x1xf32, #tpu.memory_space<vmem>>) attributes {dimension_semantics = [#tpu.dimension_semantics<arbitrary>], iteration_bounds = array<i64: 1>, scalar_prefetch = 0 : i64, scratch_operands = 2 : i64, tpu.core_type = #tpu.core_type<tc>, window_params = [{transform_indices = @transform_0, window_bounds = array<i64: 16, 32>}, {pipeline_mode = #tpu.pipeline_mode<synchronous>, transform_indices = @transform_1, window_bounds = array<i64: 32, 128>}, {transform_indices = @transform_2, window_bounds = array<i64: 16, 1>}, {pipeline_mode = #tpu.pipeline_mode<synchronous>, transform_indices = @transform_3, window_bounds = array<i64: 1, 1>}]} {
    %c0_i32 = arith.constant 0 : i32
    %0 = arith.cmpi eq, %arg0, %c0_i32 : i32
    %1 = arith.extui %0 : i1 to i32
    %c0_i32_0 = arith.constant 0 : i32
    %2 = arith.cmpi ne, %1, %c0_i32_0 : i32
    scf.if %2 {
      %cst_21 = arith.constant 0.000000e+00 : f32
      %42 = vector.broadcast %cst_21 : f32 to vector<1x1xf32>
      %c0_22 = arith.constant 0 : index
      %c0_23 = arith.constant 0 : index
      %43 = vector.load %arg5[%c0_22, %c0_23] : memref<1x1xf32, #tpu.memory_space<vmem>>, vector<1x1xf32>
      tpu.vector_store %arg5[%c0_22, %c0_23], %42 {strides = array<i32>} : memref<1x1xf32, #tpu.memory_space<vmem>>, vector<1x1xf32>,
      %cst_24 = arith.constant 0.000000e+00 : f32
      %44 = vector.broadcast %cst_24 : f32 to vector<1x1xf32>
      %c0_25 = arith.constant 0 : index
      %c0_26 = arith.constant 0 : index
      %45 = vector.load %arg6[%c0_25, %c0_26] : memref<1x1xf32, #tpu.memory_space<vmem>>, vector<1x1xf32>
      tpu.vector_store %arg6[%c0_25, %c0_26], %44 {strides = array<i32>} : memref<1x1xf32, #tpu.memory_space<vmem>>, vector<1x1xf32>,
    } else {
    }
    %c0 = arith.constant 0 : index
    %c0_1 = arith.constant 0 : index
    %3 = vector.load %arg1[%c0, %c0_1] : memref<16x32xf32, #tpu.memory_space<vmem>>, vector<16x32xf32>
    %c0_2 = arith.constant 0 : index
    %c0_3 = arith.constant 0 : index
    %4 = vector.load %arg2[%c0_2, %c0_3] : memref<32x128xf32, #tpu.memory_space<vmem>>, vector<32x128xf32>
    %cst = arith.constant dense<0.000000e+00> : vector<16x128xf32>
    %5 = tpu.matmul %3, %4, %cst {dimension_numbers = #tpu.dot_dimension_numbers<[1], [0], [0], [1], [0, 0, 1, 1], [], []>} : vector<16x32xf32>, vector<32x128xf32>, vector<16x128xf32> -> vector<16x128xf32>
    %cst_4 = arith.constant dense<0xFF800000> : vector<16xf32>
    %6 = vector.multi_reduction <maximumf>, %5, %cst_4 [1] : vector<16x128xf32> to vector<16xf32>
    %7 = vector.shape_cast %6 : vector<16xf32> to vector<16x1xf32>
    %8 = vector.broadcast %7 : vector<16x1xf32> to vector<16x128xf32>
    %9 = arith.subf %5, %8 : vector<16x128xf32>
    %10 = math.exp %9 : vector<16x128xf32>
    %cst_5 = arith.constant dense<0.000000e+00> : vector<16xf32>
    %11 = vector.multi_reduction <add>, %10, %cst_5 [1] : vector<16x128xf32> to vector<16xf32>
    %12 = vector.shape_cast %11 : vector<16xf32> to vector<16x1xf32>
    %13 = math.log %12 : vector<16x1xf32>
    %c0_6 = arith.constant 0 : index
    %c0_7 = arith.constant 0 : index
    %14 = vector.load %arg3[%c0_6, %c0_7] : memref<16x1xi32, #tpu.memory_space<vmem>>, vector<16x1xi32>
    %15 = tpu.iota {dimensions = array<i32: 1>} : vector<16x128xi32>
    %16 = vector.broadcast %14 : vector<16x1xi32> to vector<16x128xi32>
    %17 = arith.cmpi eq, %15, %16 : vector<16x128xi32>
    %18 = arith.extui %17 : vector<16x128xi1> to vector<16x128xi32>
    %19 = arith.sitofp %18 : vector<16x128xi32> to vector<16x128xf32>
    %20 = arith.mulf %9, %19 : vector<16x128xf32>
    %cst_8 = arith.constant dense<0.000000e+00> : vector<16xf32>
    %21 = vector.multi_reduction <add>, %20, %cst_8 [1] : vector<16x128xf32> to vector<16xf32>
    %22 = vector.shape_cast %21 : vector<16xf32> to vector<16x1xf32>
    %c-1_i32 = arith.constant -1 : i32
    %23 = vector.broadcast %c-1_i32 : i32 to vector<16x1xi32>
    %24 = arith.cmpi ne, %14, %23 : vector<16x1xi32>
    %25 = arith.extui %24 : vector<16x1xi1> to vector<16x1xi32>
    %26 = arith.sitofp %25 : vector<16x1xi32> to vector<16x1xf32>
    %27 = arith.subf %13, %22 : vector<16x1xf32>
    %28 = arith.mulf %27, %26 : vector<16x1xf32>
    %c0_9 = arith.constant 0 : index
    %c0_10 = arith.constant 0 : index
    %29 = vector.load %arg5[%c0_9, %c0_10] : memref<1x1xf32, #tpu.memory_space<vmem>>, vector<1x1xf32>
    %cst_11 = arith.constant dense<0.000000e+00> : vector<1xf32>
    %30 = vector.multi_reduction <add>, %28, %cst_11 [0] : vector<16x1xf32> to vector<1xf32>
    %31 = vector.shape_cast %30 : vector<1xf32> to vector<1x1xf32>
    %32 = arith.addf %29, %31 : vector<1x1xf32>
    %c0_12 = arith.constant 0 : index
    %c0_13 = arith.constant 0 : index
    %33 = vector.load %arg5[%c0_12, %c0_13] : memref<1x1xf32, #tpu.memory_space<vmem>>, vector<1x1xf32>
    tpu.vector_store %arg5[%c0_12, %c0_13], %32 {strides = array<i32>} : memref<1x1xf32, #tpu.memory_space<vmem>>, vector<1x1xf32>,
    %c0_14 = arith.constant 0 : index
    %c0_15 = arith.constant 0 : index
    %34 = vector.load %arg6[%c0_14, %c0_15] : memref<1x1xf32, #tpu.memory_space<vmem>>, vector<1x1xf32>
    %cst_16 = arith.constant dense<0.000000e+00> : vector<1xf32>
    %35 = vector.multi_reduction <add>, %26, %cst_16 [0] : vector<16x1xf32> to vector<1xf32>
    %36 = vector.shape_cast %35 : vector<1xf32> to vector<1x1xf32>
    %37 = arith.addf %34, %36 : vector<1x1xf32>
    %c0_17 = arith.constant 0 : index
    %c0_18 = arith.constant 0 : index
    %38 = vector.load %arg6[%c0_17, %c0_18] : memref<1x1xf32, #tpu.memory_space<vmem>>, vector<1x1xf32>
    tpu.vector_store %arg6[%c0_17, %c0_18], %37 {strides = array<i32>} : memref<1x1xf32, #tpu.memory_space<vmem>>, vector<1x1xf32>,
    %c0_i32_19 = arith.constant 0 : i32
    %39 = arith.cmpi eq, %arg0, %c0_i32_19 : i32
    %40 = arith.extui %39 : i1 to i32
    %c0_i32_20 = arith.constant 0 : i32
    %41 = arith.cmpi ne, %40, %c0_i32_20 : i32
    scf.if %41 {
      %c0_21 = arith.constant 0 : index
      %c0_22 = arith.constant 0 : index
      %42 = vector.load %arg5[%c0_21, %c0_22] : memref<1x1xf32, #tpu.memory_space<vmem>>, vector<1x1xf32>
      %c0_23 = arith.constant 0 : index
      %c0_24 = arith.constant 0 : index
      %43 = vector.load %arg6[%c0_23, %c0_24] : memref<1x1xf32, #tpu.memory_space<vmem>>, vector<1x1xf32>
      %44 = arith.divf %42, %43 : vector<1x1xf32>
      %c0_25 = arith.constant 0 : index
      %c0_26 = arith.constant 0 : index
      %45 = vector.load %arg4[%c0_25, %c0_26] : memref<1x1xf32, #tpu.memory_space<vmem>>, vector<1x1xf32>
      tpu.vector_store %arg4[%c0_25, %c0_26], %44 {strides = array<i32>} : memref<1x1xf32, #tpu.memory_space<vmem>>, vector<1x1xf32>,
    } else {
    }
    return
  }
  func.func @transform_0(%arg0: i32) -> (i32, i32) {
    %c0_i32 = arith.constant 0 : i32
    %c0_i32_0 = arith.constant 0 : i32
    return %arg0, %c0_i32 : i32, i32
  }
  func.func @transform_1(%arg0: i32) -> (i32, i32) {
    %c0_i32 = arith.constant 0 : i32
    %c0_i32_0 = arith.constant 0 : i32
    %c0_i32_1 = arith.constant 0 : i32
    return %c0_i32, %c0_i32_0 : i32, i32
  }
  func.func @transform_2(%arg0: i32) -> (i32, i32) {
    %c0_i32 = arith.constant 0 : i32
    %c0_i32_0 = arith.constant 0 : i32
    return %arg0, %c0_i32 : i32, i32
  }
  func.func @transform_3(%arg0: i32) -> (i32, i32) {
    %c0_i32 = arith.constant 0 : i32
    %c0_i32_0 = arith.constant 0 : i32
    %c0_i32_1 = arith.constant 0 : i32
    return %c0_i32, %c0_i32_0 : i32, i32
  }
}

</mosaic_0001>

<bundles_post_ra>
// kernel: tpu_custom_call.1
= control target key start
LH: loop header
LB: loop body
LE: loop exit
PB: predicated region body
PF: predicated region fallthrough
CT: control target
= control target key end

     0   :  { %8 = vsyncpa [#allocation5], 0  ;;  %s391_s0 = inlined_call_operand.vmem [shape: f32[16,32], index: 0, kind: input, shape index: {}]   ;;  %s392_s1 = inlined_call_operand.hbm [shape: f32[32,128], index: 1, kind: input, shape index: {}]   ;;  %s393_s2 = inlined_call_operand.vmem [shape: s32[16,1], index: 2, kind: input, shape index: {}]   ;;  %s394_s3 = inlined_call_operand.hbm [shape: f32[1,1], index: 3, kind: output, shape index: {}]  }
   0x1   :  { %9 = vsyncpa [#allocation6], 0  ;;  %s320_s12 = smov [#allocation4]   ;;  %s272_s16 = scalar_lea.hbm %s392_s1, 512 }
   0x2   :  { %s17_s13 = sshll.u32 %s320_s12, 4  ;;  %p273_p0 = scmp.ne.s32.totalorder %s392_s1, %s272_s16  ;;  %s18_s13 = int_to_ptr.vmem [resolvable:$true] %s17_s13 }
   0x3   :  { %p276_p1 = scmp.lt.u32.totalorder %s272_s16, %s392_s1 }
   0x5   :  { %p278_p2 = pnand %p276_p1, %p273_p0 }
   0x7   :  { %281 = shalt.err (!%p278_p2)
}
   0x8   :  { %s282_s21 = scalar_lea.vmem %s18_s13, 512  ;;  %p287_p4 = scmp.lt.s32.totalorder %s18_s13, %s18_s13 }
   0x9   :  { %p283_p3 = scmp.ne.s32.totalorder %s18_s13, %s282_s21  ;;  %p288_p5 = scmp.lt.s32.totalorder %s282_s21, %s282_s21 }
   0xb   :  { %p289_p6 = por %p288_p5, %p287_p4 }
   0xd   :  { %p290_p7 = pnand %p289_p6, %p283_p3 }
   0xf   :  { %293 = shalt.err (!%p290_p7)
}
  0x10   :  { %s321_s22 = smov 128   ;;  %s322_s23 = smov 8  }
  0x11   :  { %23 = dma.hbm_to_vmem [thread:$0]  %s392_s1, 512, %s18_s13, [#allocation5], %s321_s22, %s321_s22, %s322_s23  }
  0x12   :  { %316 = dma.done.wait [#allocation5], 512  }
  0x13   :  { %317 = vsyncadd [#allocation5], 4294966784  ;;  %vm42_vm0 = vcmask 261120   ;;  %v38_v0 = vld [vmem:[#allocation4] sm:$0xff]  ;;  %v39_v1 = vld [vmem:[#allocation4 + $0x8] sm:$0xff]  ;;  %v323_v9 = vmov 0   ;;  %v144_v16 = vlaneseq }
  0x14   :  { %v40_v2 = vld [vmem:[#allocation4 + $0x10] sm:$0xff]  ;;  %v246_v3 = vpack.c.bf16 %v39_v1, %v38_v0  ;;  %v41_v4 = vld [vmem:[#allocation4 + $0x18] sm:$0xff]  ;;  %v37_v7 = vld [vmem:[%s391_s0 + $0x8] sm:$0xff]  ;;  %260 = vset.pattern.permute.xlu1 %v323_v9  ;;  %261 = vset.pattern.permute.xlu0 %v323_v9  ;;  %v324_v24 = vmov 0.0   ;;  %vm175_vm4 = vcmask 7168   ;;  %vm33_vm6 = vcmask 0  }
  0x15   :  { %v36_v5 = vld [vmem:[%s391_s0] sm:$0xff]  ;;  %v250_v6 = vpack.c.bf16 %v41_v4, %v40_v2  ;;  %v143_v10 = vld [vmem:[%s393_s2 + $0x8] sm:$0xff]  ;;  %v145_v21 = vand.u32 127, %v144_v16  ;;  %34 = vst.msk [vmem:[#allocation2] sm:$0x1] %vm33_vm6, %v324_v24  ;;  %s325_s0 = smov [#allocation7]  }
  0x16   :  { %243 = vmatprep.mubr.msk.f32.mxu0 %vm42_vm0, %v36_v5  ;;  %247 = vmatprep.subr.bf16.mxu0 %v246_v3  ;;  %v142_v8 = vld [vmem:[%s393_s2] sm:$0xff]  ;;  %vm165_vm5 = vcmp.ne.s32.totalorder %v143_v10, 4294967295  ;;  %35 = vst.msk [vmem:[#allocation3] sm:$0x1] %vm33_vm6, %v324_v24  ;;  %s214_s2 = sshll.u32 %s325_s0, 4  ;;  %s215_s2 = int_to_ptr.vmem [resolvable:$true] %s214_s2 }
  0x17   :  { %249 = vmatpush3.bf16.msra.mxu0 %v246_v3  ;;  %147 = vperm.xlu1 %260, %v142_v8   ;;  %vm164_vm3 = vcmp.ne.s32.totalorder %v142_v8, 4294967295  ;;  %v228_v32 = vsel %vm165_vm5, 1.0, %v324_v24  ;;  %s294_s6 = scalar_lea.vmem %s215_s2, 16  ;;  %s298_s7 = scalar_lea.vmem %s215_s2, 32 }
  0x18   :  { %251 = vmatprep.subr.bf16.mxu0 %v250_v6  ;;  %v227_v30 = vsel %vm164_vm3, 1.0, %v324_v24  ;;  %v190_v33 = vsel %vm175_vm4, %v228_v32, 0.0  ;;  %p295_p8 = scmp.ne.s32.totalorder %s215_s2, %s294_s6  ;;  %p299_p9 = scmp.lt.s32.totalorder %s215_s2, %s215_s2 }
  0x19   :  { %v189_v31 = vsel %vm175_vm4, %v227_v30, 0.0  ;;  %p300_p10 = scmp.lt.s32.totalorder %s298_s7, %s294_s6 }
  0x1a   :  { %v191_v34 = vadd.f32 %v190_v33, %v189_v31 }
  0x1b   :  { %253 = vmatpush3.bf16.msra.mxu0 %v250_v6  ;;  %150 = vperm.xlu1 %260, %v143_v10   ;;  %p301_p11 = por %p300_p10, %p299_p9 }
  0x1c   :  { %v192_v35 = vrot.slane %v191_v34, 4  ;;  %v174_v0 = vld [vmem:[#allocation2] sm:$0x1] }
  0x1d   :  { %v188_v41 = vld [vmem:[#allocation3] sm:$0x1]  ;;  %p302_p12 = pnand %p301_p11, %p295_p8 }
  0x1e   :  { %244 = vmatmul.mubr.msk.f32.vlgmr.msra.gmra.mrb[0].mxu0 %vm42_vm0, %v37_v7  ;;  %v193_v36 = vadd.f32 %v192_v35, %v191_v34 }
  0x20   :  { %v194_v37 = vrot.slane %v193_v36, 2 }
  0x22   :  { %v195_v38 = vadd.f32 %v194_v37, %v193_v36 }
  0x24   :  { %v196_v39 = vrot.slane %v195_v38, 1 }
  0x26   :  { %v197_v40 = vadd.f32 %v196_v39, %v195_v38 }
  0x28   :  { %v198_v42 = vadd.f32 %v197_v40, %v188_v41 }
  0x2a   :  { %199 = vst.msk [vmem:[#allocation3] sm:$0x1] %vm33_vm6, %v198_v42 }
  0x31   :  { %v204_v62 = vld [vmem:[#allocation3] sm:$0x1] }
  0x96   :  { %v148_v19 = vpop.permute.xlu1 %147 }
  0x97   :  { %vm152_vm1 = vcmp.eq.s32.totalorder %v145_v21, %v148_v19 }
  0x98   :  { %v225_v25 = vsel %vm152_vm1, 1.0, %v324_v24 }
  0x9a   :  { %v151_v22 = vpop.permute.xlu1 %150 }
  0x9b   :  { %vm153_vm2 = vcmp.eq.s32.totalorder %v145_v21, %v151_v22 }
  0x9c   :  { %v226_v28 = vsel %vm153_vm2, 1.0, %v324_v24 }
  0xf1   :  { %v245_v11 = vpop.f32.mrb[0].mxu0 }
  0xf2   :  { %v115_v12 = vpop.f32.mrb[1].mxu0 }
  0xf3   :  { %124 = vmax.xlane.f32.xlu0 %v115_v12 }
  0xf7   :  { %126 = vmax.xlane.f32.xlu0 %v245_v11 }
 0x180   :  { %v125_v13 = vpop.xlane.xlu0 %124 }
 0x181   :  { %v128_v14 = vsub.f32 %v115_v12, %v125_v13 }
 0x183   :  { %v130_v15 = vmul.f32 1.442695, %v128_v14  ;;  %v158_v26 = vmul.f32 %v225_v25, %v128_v14 }
 0x184   :  { %v127_v17 = vpop.xlane.xlu0 %126 }
 0x185   :  { %262 = vpow2.f32 %v130_v15  ;;  %v129_v18 = vsub.f32 %v245_v11, %v127_v17 }
 0x187   :  { %v132_v20 = vmul.f32 1.442695, %v129_v18  ;;  %v159_v29 = vmul.f32 %v226_v28, %v129_v18 }
 0x189   :  { %264 = vpow2.f32 %v132_v20 }
 0x18f   :  { %v263_v23 = vpop.eup %262 }
 0x190   :  { %134 = vadd.xlane.f32.xlu0 %v263_v23 }
 0x193   :  { %v265_v27 = vpop.eup %264 }
 0x194   :  { %160 = vadd.xlane.f32.xlu0 %v158_v26  ;;  %136 = vadd.xlane.f32.xlu1 %v265_v27 }
 0x198   :  { %162 = vadd.xlane.f32.xlu0 %v159_v29 }
 0x21d   :  { %v135_v43 = vpop.xlane.xlu0 %134 }
 0x21e   :  { %266 = vlog2.f32 %v135_v43 }
 0x221   :  { %v137_v44 = vpop.xlane.xlu1 %136  ;;  %v161_v46 = vpop.xlane.xlu0 %160 }
 0x222   :  { %268 = vlog2.f32 %v137_v44 }
 0x223   :  { %270 = vrcp.f32 %v204_v62 }
 0x225   :  { %v163_v51 = vpop.xlane.xlu0 %162 }
 0x228   :  { %v267_v45 = vpop.eup %266 }
 0x229   :  { %v139_v47 = vmul.f32 0.6931472, %v267_v45 }
 0x22b   :  { %v170_v48 = vsub.f32 %v139_v47, %v161_v46 }
 0x22c   :  { %v269_v49 = vpop.eup %268 }
 0x22d   :  { %v141_v50 = vmul.f32 0.6931472, %v269_v49  ;;  %v172_v52 = vmul.f32 %v227_v30, %v170_v48  ;;  %v271_v3 = vpop.eup %270 }
 0x22f   :  { %v171_v53 = vsub.f32 %v141_v50, %v163_v51  ;;  %v176_v55 = vsel %vm175_vm4, %v172_v52, 0.0 }
 0x231   :  { %v173_v54 = vmul.f32 %v228_v32, %v171_v53 }
 0x233   :  { %v177_v56 = vsel %vm175_vm4, %v173_v54, 0.0 }
 0x234   :  { %v178_v57 = vadd.f32 %v177_v56, %v176_v55 }
 0x236   :  { %v179_v58 = vrot.slane %v178_v57, 4 }
 0x238   :  { %v180_v59 = vadd.f32 %v179_v58, %v178_v57 }
 0x23a   :  { %v181_v60 = vrot.slane %v180_v59, 2 }
 0x23c   :  { %v182_v61 = vadd.f32 %v181_v60, %v180_v59 }
 0x23e   :  { %v183_v63 = vrot.slane %v182_v61, 1 }
 0x240   :  { %v184_v1 = vadd.f32 %v183_v63, %v182_v61 }
 0x242   :  { %v185_v2 = vadd.f32 %v184_v1, %v174_v0 }
 0x244   :  { %187 = vst.msk [vmem:[#allocation2] sm:$0x1] %vm33_vm6, %v185_v2 }
 0x24b   :  { %v203_v4 = vld [vmem:[#allocation2] sm:$0x1] }
 0x24c   :  { %v206_v5 = vmul.f32 %v271_v3, %v203_v4 }
 0x24e   :  { %207 = vst.msk [vmem:[#allocation7] sm:$0x1] %vm33_vm6, %v206_v5 }
 0x24f   :  { %305 = shalt.err (!%p302_p12)
}
 0x250   :  { %s306_s10 = scalar_lea.hbm %s394_s3, 16 }
 0x251   :  { %p307_p13 = scmp.ne.s32.totalorder %s394_s3, %s306_s10  ;;  %p310_p0 = scmp.lt.u32.totalorder %s306_s10, %s394_s3 }
 0x253   :  { %p312_p1 = pnand %p310_p0, %p307_p13 }
 0x255   :  { %315 = shalt.err (!%p312_p1)
}
 0x256   :  { %217 = dma.vmem_to_hbm [thread:$0]  %s215_s2, 16, %s394_s3, [#allocation6]  }
 0x257   :  { %318 = dma.done.wait [#allocation6], 16  }
 0x258   :  { %319 = vsyncadd [#allocation6], 4294967280 }
 0x259   :  { %221 = vsyncpa [#allocation5], 1 }
 0x25a   :  { %222 = vsyncpa [#allocation6], 1 }

</bundles_post_ra>
